<compile_context>
chip_gen: v7x
topology: tpu7x:2x2x1
jax: 0.10.0
libtpu: 0.0.40
codegen_flags: <defaults>
</compile_context>

<pallas_src>
import functools

import numpy as np
import jax
import jax.numpy as jnp
from jax import lax
from jax.experimental import pallas as pl
from jax.experimental.pallas import tpu as pltpu

_EPS = 1e-6
_LA1 = 0.5   # lamd1 (SAM weight)
_LA2 = 0.1   # lamd2 (gradient-L1 weight)

# Abramowitz & Stegun 4.4.45 minimax coefficients for acos(x), 0 <= x <= 1,
# |error| <= 2e-8.  Listed a7 ... a0 for Horner evaluation.
_ACOS_COEFFS = (
    -0.0012624911, 0.0066700901, -0.0170881256, 0.0308918810,
    -0.0501743046, 0.0889789874, -0.2145988016, 1.5707963050,
)


def _acos(x):
    # TODO(synk): torch.acos has no native Mosaic lowering; implemented via the
    # A&S 4.4.45 minimax polynomial (pure mul/add + one sqrt), |err| <= 2e-8.
    a = jnp.abs(x)
    p = _ACOS_COEFFS[0]
    for c in _ACOS_COEFFS[1:]:
        p = p * a + c
    r = jnp.sqrt(1.0 - a) * p
    return jnp.where(x < 0.0, np.pi - r, r)


def _grad_flat(x, width):
    """cal_gradient() on one (C, H*W) slab.

    Backward differences along W (shift 1) and H (shift `width`) are lane
    rotations (XLU); the C difference is a sublane slice.  Rows are cropped to
    c >= 1; lanes with h == 0 or w == 0 hold wrapped junk and are zeroed by the
    caller's static validity mask before the reduction.
    """
    dw = x - pltpu.roll(x, shift=1, axis=1)        # x[c,h,w] - x[c,h,w-1]
    dh = x - pltpu.roll(x, shift=width, axis=1)    # x[c,h,w] - x[c,h-1,w]
    dc = x[1:, :] - x[:-1, :]                      # x[c,h,w] - x[c-1,h,w]
    dw = dw[1:, :]
    dh = dh[1:, :]
    return jnp.sqrt(dw * dw + dh * dh + dc * dc + _EPS)   # (C-1, H*W)


def _loss_kernel(mask_ref, y_ref, gt_ref, l1_ref, sam_ref, gra_ref, *, width):
    b = pl.program_id(0)

    # Running-sum accumulators live in the resident (1,1) outputs.
    @pl.when(b == 0)
    def _():
        l1_ref[...] = jnp.zeros_like(l1_ref)
        sam_ref[...] = jnp.zeros_like(sam_ref)
        gra_ref[...] = jnp.zeros_like(gra_ref)

    y = y_ref[...].astype(jnp.float32)     # (C, H*W)
    gt = gt_ref[...].astype(jnp.float32)

    # --- fidelity: sum |y - gt| ---------------------------------------------
    l1_ref[...] += jnp.sum(jnp.abs(y - gt), keepdims=True)

    # --- SAM: angle between the C-dim spectral vectors at every pixel --------
    inner = jnp.sum(y * gt, axis=0, keepdims=True)     # (1, H*W)
    ssy = jnp.sum(y * y, axis=0, keepdims=True)
    ssg = jnp.sum(gt * gt, axis=0, keepdims=True)
    # divisor = max(||y||*||gt||, eps) realised as one maximum + one rsqrt.
    cosA = inner * lax.rsqrt(jnp.maximum(ssy * ssg, _EPS * _EPS))
    cosA = jnp.clip(cosA, -1.0 + _EPS, 1.0 - _EPS)
    sam_ref[...] += jnp.sum(_acos(cosA), keepdims=True)

    # --- gradient L1: sum |grad(y) - grad(gt)| over the valid crop -----------
    g_y = _grad_flat(y, width)
    g_g = _grad_flat(gt, width)
    gra_ref[...] += jnp.sum(jnp.abs(g_y - g_g) * mask_ref[...], keepdims=True)


def pallas_loss(y, gt, la1=_LA1, la2=_LA2):
    """Forward pass of the PyTorch `Loss` module."""
    assert y.shape == gt.shape and y.ndim == 4
    B, C, H, W = y.shape
    HW = H * W

    # Contiguous (free) reshape to a lane-dense layout: minor dim H*W >= 128.
    y2 = y.reshape(B, C, HW)
    gt2 = gt.reshape(B, C, HW)

    # Static validity mask for the gradient crop (h >= 1 and w >= 1).
    hh, ww = np.meshgrid(np.arange(H), np.arange(W), indexing="ij")
    mask = jnp.asarray(((hh >= 1) & (ww >= 1)).reshape(1, HW).astype(np.float32))

    img_spec = pl.BlockSpec((None, C, HW), lambda b: (b, 0, 0))
    resident_vmem = pl.BlockSpec(memory_space=pltpu.MemorySpace.VMEM)
    acc_shape = jax.ShapeDtypeStruct((1, 1), jnp.float32)

    l1_sum, sam_sum, gra_sum = pl.pallas_call(
        functools.partial(_loss_kernel, width=W),
        grid=(B,),
        in_specs=[resident_vmem, img_spec, img_spec],
        out_specs=(resident_vmem, resident_vmem, resident_vmem),
        out_shape=(acc_shape, acc_shape, acc_shape),
        compiler_params=pltpu.CompilerParams(
            # B is the running-sum (reduction) axis -> "arbitrary" (parallel
            # would race the accumulating outputs across TensorCores).
            dimension_semantics=("arbitrary",),
            vmem_limit_bytes=32 * 1024 * 1024,
        ),
    )(mask, y2, gt2)

    # Final normalization / weighting: a handful of scalar XLA ops.
    loss1 = l1_sum[0, 0] / (B * C * H * W)
    sam = (sam_sum[0, 0] / (B * H * W)) / np.pi
    loss3 = gra_sum[0, 0] / (B * (C - 1) * (H - 1) * (W - 1))
    return loss1 + la1 * sam + la2 * loss3


# ----------------------------- pure-JAX reference ----------------------------

def _gradient_ref(a):
    base = a[:, 1:, 1:, 1:]
    gx = base - a[:, 1:, :-1, 1:]
    gy = base - a[:, 1:, 1:, :-1]
    gc = base - a[:, :-1, 1:, 1:]
    return jnp.sqrt(gx * gx + gy * gy + gc * gc + _EPS)


def _ref_loss(y, gt, la1=_LA1, la2=_LA2):
    """Pure-JAX reference mirroring the PyTorch code exactly."""
    y = y.astype(jnp.float32)
    gt = gt.astype(jnp.float32)
    loss1 = jnp.mean(jnp.abs(y - gt))

    inner = jnp.sum(y * gt, axis=1, keepdims=True)
    len1 = jnp.sqrt(jnp.sum(y * y, axis=1, keepdims=True))
    len2 = jnp.sqrt(jnp.sum(gt * gt, axis=1, keepdims=True))
    divisor = len1 * len2
    divisor = divisor + (divisor == 0.0).astype(jnp.float32) * _EPS
    cosA = jnp.clip(jnp.sum(inner / divisor, axis=1), -1.0 + _EPS, 1.0 - _EPS)
    sam = jnp.mean(jnp.arccos(cosA)) / np.pi

    loss3 = jnp.mean(jnp.abs(_gradient_ref(y) - _gradient_ref(gt)))
    return loss1 + la1 * sam + la2 * loss3


if __name__ == "__main__":
    B, C, H, W = 2, 4, 16, 16
    key = jax.random.PRNGKey(0)
    ky, kg = jax.random.split(key)
    y = jax.random.normal(ky, (B, C, H, W), dtype=jnp.float32)
    gt = jax.random.normal(kg, (B, C, H, W), dtype=jnp.float32)

    loss = jax.block_until_ready(jax.jit(pallas_loss)(y, gt))
    ref = jax.block_until_ready(_ref_loss(y, gt))

    if not np.allclose(np.asarray(loss), np.asarray(ref), rtol=1e-4, atol=1e-5):
        raise AssertionError(f"mismatch: pallas={float(loss)} ref={float(ref)}")

    print("KERNEL_OK")
</pallas_src>

<mosaic_0001>
module attributes {stable_mosaic.version = 11 : i64} {
  func.func @_loss_kernel(%arg0: i32, %arg1: memref<1x256xf32, #tpu.memory_space<vmem>>, %arg2: memref<1x4x256xf32, #tpu.memory_space<vmem>>, %arg3: memref<1x4x256xf32, #tpu.memory_space<vmem>>, %arg4: memref<1x1xf32, #tpu.memory_space<vmem>>, %arg5: memref<1x1xf32, #tpu.memory_space<vmem>>, %arg6: memref<1x1xf32, #tpu.memory_space<vmem>>) attributes {dimension_semantics = [#tpu.dimension_semantics<arbitrary>], iteration_bounds = array<i64: 2>, scalar_prefetch = 0 : i64, scratch_operands = 0 : i64, tpu.core_type = #tpu.core_type<tc>, window_params = [{pipeline_mode = #tpu.pipeline_mode<synchronous>, transform_indices = @transform_0, window_bounds = array<i64: 1, 256>}, {transform_indices = @transform_1, window_bounds = array<i64: 1, 4, 256>}, {transform_indices = @transform_2, window_bounds = array<i64: 1, 4, 256>}, {pipeline_mode = #tpu.pipeline_mode<synchronous>, transform_indices = @transform_3, window_bounds = array<i64: 1, 1>}, {pipeline_mode = #tpu.pipeline_mode<synchronous>, transform_indices = @transform_4, window_bounds = array<i64: 1, 1>}, {pipeline_mode = #tpu.pipeline_mode<synchronous>, transform_indices = @transform_5, window_bounds = array<i64: 1, 1>}]} {
    %c0_i32 = arith.constant 0 : i32
    %0 = arith.cmpi eq, %arg0, %c0_i32 : i32
    %1 = arith.extui %0 : i1 to i32
    %c0_i32_0 = arith.constant 0 : i32
    %2 = arith.cmpi ne, %1, %c0_i32_0 : i32
    scf.if %2 {
      %cst_43 = arith.constant 0.000000e+00 : f32
      %122 = vector.broadcast %cst_43 : f32 to vector<1x1xf32>
      %c0_44 = arith.constant 0 : index
      %c0_45 = arith.constant 0 : index
      %123 = vector.load %arg4[%c0_44, %c0_45] : memref<1x1xf32, #tpu.memory_space<vmem>>, vector<1x1xf32>
      tpu.vector_store %arg4[%c0_44, %c0_45], %122 {strides = array<i32>} : memref<1x1xf32, #tpu.memory_space<vmem>>, vector<1x1xf32>,
      %cst_46 = arith.constant 0.000000e+00 : f32
      %124 = vector.broadcast %cst_46 : f32 to vector<1x1xf32>
      %c0_47 = arith.constant 0 : index
      %c0_48 = arith.constant 0 : index
      %125 = vector.load %arg5[%c0_47, %c0_48] : memref<1x1xf32, #tpu.memory_space<vmem>>, vector<1x1xf32>
      tpu.vector_store %arg5[%c0_47, %c0_48], %124 {strides = array<i32>} : memref<1x1xf32, #tpu.memory_space<vmem>>, vector<1x1xf32>,
      %cst_49 = arith.constant 0.000000e+00 : f32
      %126 = vector.broadcast %cst_49 : f32 to vector<1x1xf32>
      %c0_50 = arith.constant 0 : index
      %c0_51 = arith.constant 0 : index
      %127 = vector.load %arg6[%c0_50, %c0_51] : memref<1x1xf32, #tpu.memory_space<vmem>>, vector<1x1xf32>
      tpu.vector_store %arg6[%c0_50, %c0_51], %126 {strides = array<i32>} : memref<1x1xf32, #tpu.memory_space<vmem>>, vector<1x1xf32>,
    } else {
    }
    %c0 = arith.constant 0 : index
    %c0_1 = arith.constant 0 : index
    %c0_2 = arith.constant 0 : index
    %3 = vector.load %arg2[%c0, %c0_1, %c0_2] : memref<1x4x256xf32, #tpu.memory_space<vmem>>, vector<1x4x256xf32>
    %4 = vector.shape_cast %3 : vector<1x4x256xf32> to vector<4x256xf32>
    %c0_3 = arith.constant 0 : index
    %c0_4 = arith.constant 0 : index
    %c0_5 = arith.constant 0 : index
    %5 = vector.load %arg3[%c0_3, %c0_4, %c0_5] : memref<1x4x256xf32, #tpu.memory_space<vmem>>, vector<1x4x256xf32>
    %6 = vector.shape_cast %5 : vector<1x4x256xf32> to vector<4x256xf32>
    %c0_6 = arith.constant 0 : index
    %c0_7 = arith.constant 0 : index
    %7 = vector.load %arg4[%c0_6, %c0_7] : memref<1x1xf32, #tpu.memory_space<vmem>>, vector<1x1xf32>
    %8 = arith.subf %4, %6 : vector<4x256xf32>
    %9 = math.absf %8 : vector<4x256xf32>
    %10 = vector.shape_cast %9 : vector<4x256xf32> to vector<1x4x256xf32>
    %cst = arith.constant dense<0.000000e+00> : vector<1xf32>
    %11 = vector.multi_reduction <add>, %10, %cst [1, 2] : vector<1x4x256xf32> to vector<1xf32>
    %12 = vector.shape_cast %11 : vector<1xf32> to vector<1x1x1xf32>
    %13 = vector.extract %12[0, 0, 0] : f32 from vector<1x1x1xf32>
    %14 = vector.broadcast %13 : f32 to vector<1x1xf32>
    %15 = arith.addf %7, %14 : vector<1x1xf32>
    %c0_8 = arith.constant 0 : index
    %c0_9 = arith.constant 0 : index
    %16 = vector.load %arg4[%c0_8, %c0_9] : memref<1x1xf32, #tpu.memory_space<vmem>>, vector<1x1xf32>
    tpu.vector_store %arg4[%c0_8, %c0_9], %15 {strides = array<i32>} : memref<1x1xf32, #tpu.memory_space<vmem>>, vector<1x1xf32>,
    %17 = arith.mulf %4, %6 : vector<4x256xf32>
    %cst_10 = arith.constant dense<0.000000e+00> : vector<256xf32>
    %18 = vector.multi_reduction <add>, %17, %cst_10 [0] : vector<4x256xf32> to vector<256xf32>
    %19 = vector.shape_cast %18 : vector<256xf32> to vector<1x256xf32>
    %20 = arith.mulf %4, %4 : vector<4x256xf32>
    %cst_11 = arith.constant dense<0.000000e+00> : vector<256xf32>
    %21 = vector.multi_reduction <add>, %20, %cst_11 [0] : vector<4x256xf32> to vector<256xf32>
    %22 = vector.shape_cast %21 : vector<256xf32> to vector<1x256xf32>
    %23 = arith.mulf %6, %6 : vector<4x256xf32>
    %cst_12 = arith.constant dense<0.000000e+00> : vector<256xf32>
    %24 = vector.multi_reduction <add>, %23, %cst_12 [0] : vector<4x256xf32> to vector<256xf32>
    %25 = vector.shape_cast %24 : vector<256xf32> to vector<1x256xf32>
    %26 = arith.mulf %22, %25 : vector<1x256xf32>
    %cst_13 = arith.constant 9.99999996E-13 : f32
    %27 = vector.broadcast %cst_13 : f32 to vector<1x256xf32>
    %28 = arith.maximumf %26, %27 : vector<1x256xf32>
    %29 = math.rsqrt %28 : vector<1x256xf32>
    %30 = arith.mulf %19, %29 : vector<1x256xf32>
    %cst_14 = arith.constant -0.999998986 : f32
    %cst_15 = arith.constant 0.999998986 : f32
    %31 = vector.broadcast %cst_14 : f32 to vector<1x256xf32>
    %32 = arith.maximumf %31, %30 : vector<1x256xf32>
    %33 = vector.broadcast %cst_15 : f32 to vector<1x256xf32>
    %34 = arith.minimumf %33, %32 : vector<1x256xf32>
    %c0_16 = arith.constant 0 : index
    %c0_17 = arith.constant 0 : index
    %35 = vector.load %arg5[%c0_16, %c0_17] : memref<1x1xf32, #tpu.memory_space<vmem>>, vector<1x1xf32>
    %36 = math.absf %34 : vector<1x256xf32>
    %cst_18 = arith.constant -0.0012624911 : f32
    %37 = vector.broadcast %cst_18 : f32 to vector<1x256xf32>
    %38 = arith.mulf %37, %36 : vector<1x256xf32>
    %cst_19 = arith.constant 6.670090e-03 : f32
    %39 = vector.broadcast %cst_19 : f32 to vector<1x256xf32>
    %40 = arith.addf %38, %39 : vector<1x256xf32>
    %41 = arith.mulf %40, %36 : vector<1x256xf32>
    %cst_20 = arith.constant -0.0170881264 : f32
    %42 = vector.broadcast %cst_20 : f32 to vector<1x256xf32>
    %43 = arith.addf %41, %42 : vector<1x256xf32>
    %44 = arith.mulf %43, %36 : vector<1x256xf32>
    %cst_21 = arith.constant 0.0308918804 : f32
    %45 = vector.broadcast %cst_21 : f32 to vector<1x256xf32>
    %46 = arith.addf %44, %45 : vector<1x256xf32>
    %47 = arith.mulf %46, %36 : vector<1x256xf32>
    %cst_22 = arith.constant -0.0501743034 : f32
    %48 = vector.broadcast %cst_22 : f32 to vector<1x256xf32>
    %49 = arith.addf %47, %48 : vector<1x256xf32>
    %50 = arith.mulf %49, %36 : vector<1x256xf32>
    %cst_23 = arith.constant 0.0889789909 : f32
    %51 = vector.broadcast %cst_23 : f32 to vector<1x256xf32>
    %52 = arith.addf %50, %51 : vector<1x256xf32>
    %53 = arith.mulf %52, %36 : vector<1x256xf32>
    %cst_24 = arith.constant -0.214598805 : f32
    %54 = vector.broadcast %cst_24 : f32 to vector<1x256xf32>
    %55 = arith.addf %53, %54 : vector<1x256xf32>
    %56 = arith.mulf %55, %36 : vector<1x256xf32>
    %cst_25 = arith.constant 1.57079625 : f32
    %57 = vector.broadcast %cst_25 : f32 to vector<1x256xf32>
    %58 = arith.addf %56, %57 : vector<1x256xf32>
    %cst_26 = arith.constant 1.000000e+00 : f32
    %59 = vector.broadcast %cst_26 : f32 to vector<1x256xf32>
    %60 = arith.subf %59, %36 : vector<1x256xf32>
    %61 = math.sqrt %60 : vector<1x256xf32>
    %62 = arith.mulf %61, %58 : vector<1x256xf32>
    %cst_27 = arith.constant 0.000000e+00 : f32
    %63 = vector.broadcast %cst_27 : f32 to vector<1x256xf32>
    %64 = arith.cmpf olt, %34, %63 : vector<1x256xf32>
    %cst_28 = arith.constant 3.14159274 : f32
    %65 = vector.broadcast %cst_28 : f32 to vector<1x256xf32>
    %66 = arith.subf %65, %62 : vector<1x256xf32>
    %67 = arith.select %64, %66, %62 : vector<1x256xi1>, vector<1x256xf32>
    %68 = vector.shape_cast %67 : vector<1x256xf32> to vector<1x1x256xf32>
    %cst_29 = arith.constant dense<0.000000e+00> : vector<1xf32>
    %69 = vector.multi_reduction <add>, %68, %cst_29 [1, 2] : vector<1x1x256xf32> to vector<1xf32>
    %70 = vector.shape_cast %69 : vector<1xf32> to vector<1x1x1xf32>
    %71 = vector.extract %70[0, 0, 0] : f32 from vector<1x1x1xf32>
    %72 = vector.broadcast %71 : f32 to vector<1x1xf32>
    %73 = arith.addf %35, %72 : vector<1x1xf32>
    %c0_30 = arith.constant 0 : index
    %c0_31 = arith.constant 0 : index
    %74 = vector.load %arg5[%c0_30, %c0_31] : memref<1x1xf32, #tpu.memory_space<vmem>>, vector<1x1xf32>
    tpu.vector_store %arg5[%c0_30, %c0_31], %73 {strides = array<i32>} : memref<1x1xf32, #tpu.memory_space<vmem>>, vector<1x1xf32>,
    %c1_i32 = arith.constant 1 : i32
    %75 = tpu.dynamic_rotate %4 by %c1_i32 dim 1 : vector<4x256xf32>, i32 -> vector<4x256xf32>
    %76 = arith.subf %4, %75 : vector<4x256xf32>
    %c16_i32 = arith.constant 16 : i32
    %77 = tpu.dynamic_rotate %4 by %c16_i32 dim 1 : vector<4x256xf32>, i32 -> vector<4x256xf32>
    %78 = arith.subf %4, %77 : vector<4x256xf32>
    %79 = vector.extract_strided_slice %4 {offsets = [1, 0], sizes = [3, 256], strides = [1, 1]} : vector<4x256xf32> to vector<3x256xf32>
    %80 = vector.extract_strided_slice %4 {offsets = [0, 0], sizes = [3, 256], strides = [1, 1]} : vector<4x256xf32> to vector<3x256xf32>
    %81 = arith.subf %79, %80 : vector<3x256xf32>
    %82 = vector.extract_strided_slice %76 {offsets = [1, 0], sizes = [3, 256], strides = [1, 1]} : vector<4x256xf32> to vector<3x256xf32>
    %83 = vector.extract_strided_slice %78 {offsets = [1, 0], sizes = [3, 256], strides = [1, 1]} : vector<4x256xf32> to vector<3x256xf32>
    %84 = arith.mulf %82, %82 : vector<3x256xf32>
    %85 = arith.mulf %83, %83 : vector<3x256xf32>
    %86 = arith.addf %84, %85 : vector<3x256xf32>
    %87 = arith.mulf %81, %81 : vector<3x256xf32>
    %88 = arith.addf %86, %87 : vector<3x256xf32>
    %cst_32 = arith.constant 9.99999997E-7 : f32
    %89 = vector.broadcast %cst_32 : f32 to vector<3x256xf32>
    %90 = arith.addf %88, %89 : vector<3x256xf32>
    %91 = math.sqrt %90 : vector<3x256xf32>
    %c1_i32_33 = arith.constant 1 : i32
    %92 = tpu.dynamic_rotate %6 by %c1_i32_33 dim 1 : vector<4x256xf32>, i32 -> vector<4x256xf32>
    %93 = arith.subf %6, %92 : vector<4x256xf32>
    %c16_i32_34 = arith.constant 16 : i32
    %94 = tpu.dynamic_rotate %6 by %c16_i32_34 dim 1 : vector<4x256xf32>, i32 -> vector<4x256xf32>
    %95 = arith.subf %6, %94 : vector<4x256xf32>
    %96 = vector.extract_strided_slice %6 {offsets = [1, 0], sizes = [3, 256], strides = [1, 1]} : vector<4x256xf32> to vector<3x256xf32>
    %97 = vector.extract_strided_slice %6 {offsets = [0, 0], sizes = [3, 256], strides = [1, 1]} : vector<4x256xf32> to vector<3x256xf32>
    %98 = arith.subf %96, %97 : vector<3x256xf32>
    %99 = vector.extract_strided_slice %93 {offsets = [1, 0], sizes = [3, 256], strides = [1, 1]} : vector<4x256xf32> to vector<3x256xf32>
    %100 = vector.extract_strided_slice %95 {offsets = [1, 0], sizes = [3, 256], strides = [1, 1]} : vector<4x256xf32> to vector<3x256xf32>
    %101 = arith.mulf %99, %99 : vector<3x256xf32>
    %102 = arith.mulf %100, %100 : vector<3x256xf32>
    %103 = arith.addf %101, %102 : vector<3x256xf32>
    %104 = arith.mulf %98, %98 : vector<3x256xf32>
    %105 = arith.addf %103, %104 : vector<3x256xf32>
    %cst_35 = arith.constant 9.99999997E-7 : f32
    %106 = vector.broadcast %cst_35 : f32 to vector<3x256xf32>
    %107 = arith.addf %105, %106 : vector<3x256xf32>
    %108 = math.sqrt %107 : vector<3x256xf32>
    %c0_36 = arith.constant 0 : index
    %c0_37 = arith.constant 0 : index
    %109 = vector.load %arg6[%c0_36, %c0_37] : memref<1x1xf32, #tpu.memory_space<vmem>>, vector<1x1xf32>
    %110 = arith.subf %91, %108 : vector<3x256xf32>
    %111 = math.absf %110 : vector<3x256xf32>
    %c0_38 = arith.constant 0 : index
    %c0_39 = arith.constant 0 : index
    %112 = vector.load %arg1[%c0_38, %c0_39] : memref<1x256xf32, #tpu.memory_space<vmem>>, vector<1x256xf32>
    %113 = vector.broadcast %112 : vector<1x256xf32> to vector<3x256xf32>
    %114 = arith.mulf %111, %113 : vector<3x256xf32>
    %115 = vector.shape_cast %114 : vector<3x256xf32> to vector<1x3x256xf32>
    %cst_40 = arith.constant dense<0.000000e+00> : vector<1xf32>
    %116 = vector.multi_reduction <add>, %115, %cst_40 [1, 2] : vector<1x3x256xf32> to vector<1xf32>
    %117 = vector.shape_cast %116 : vector<1xf32> to vector<1x1x1xf32>
    %118 = vector.extract %117[0, 0, 0] : f32 from vector<1x1x1xf32>
    %119 = vector.broadcast %118 : f32 to vector<1x1xf32>
    %120 = arith.addf %109, %119 : vector<1x1xf32>
    %c0_41 = arith.constant 0 : index
    %c0_42 = arith.constant 0 : index
    %121 = vector.load %arg6[%c0_41, %c0_42] : memref<1x1xf32, #tpu.memory_space<vmem>>, vector<1x1xf32>
    tpu.vector_store %arg6[%c0_41, %c0_42], %120 {strides = array<i32>} : memref<1x1xf32, #tpu.memory_space<vmem>>, vector<1x1xf32>,
    return
  }
  func.func @transform_0(%arg0: i32) -> (i32, i32) {
    %c0_i32 = arith.constant 0 : i32
    %c0_i32_0 = arith.constant 0 : i32
    %c0_i32_1 = arith.constant 0 : i32
    return %c0_i32, %c0_i32_0 : i32, i32
  }
  func.func @transform_1(%arg0: i32) -> (i32, i32, i32) {
    %c0_i32 = arith.constant 0 : i32
    %c0_i32_0 = arith.constant 0 : i32
    %c0_i32_1 = arith.constant 0 : i32
    return %arg0, %c0_i32, %c0_i32_0 : i32, i32, i32
  }
  func.func @transform_2(%arg0: i32) -> (i32, i32, i32) {
    %c0_i32 = arith.constant 0 : i32
    %c0_i32_0 = arith.constant 0 : i32
    %c0_i32_1 = arith.constant 0 : i32
    return %arg0, %c0_i32, %c0_i32_0 : i32, i32, i32
  }
  func.func @transform_3(%arg0: i32) -> (i32, i32) {
    %c0_i32 = arith.constant 0 : i32
    %c0_i32_0 = arith.constant 0 : i32
    %c0_i32_1 = arith.constant 0 : i32
    return %c0_i32, %c0_i32_0 : i32, i32
  }
  func.func @transform_4(%arg0: i32) -> (i32, i32) {
    %c0_i32 = arith.constant 0 : i32
    %c0_i32_0 = arith.constant 0 : i32
    %c0_i32_1 = arith.constant 0 : i32
    return %c0_i32, %c0_i32_0 : i32, i32
  }
  func.func @transform_5(%arg0: i32) -> (i32, i32) {
    %c0_i32 = arith.constant 0 : i32
    %c0_i32_0 = arith.constant 0 : i32
    %c0_i32_1 = arith.constant 0 : i32
    return %c0_i32, %c0_i32_0 : i32, i32
  }
}

</mosaic_0001>

<bundles_post_ra>
// kernel: pallas_loss.1
= control target key start
LH: loop header
LB: loop body
LE: loop exit
PB: predicated region body
PF: predicated region fallthrough
CT: control target
= control target key end

     0   :  { %11 = vsyncpa [#allocation3], 0  ;;  %s965_s0 = inlined_call_operand.vmem [shape: f32[1,256], index: 0, kind: input, shape index: {}]   ;;  %s966_s1 = inlined_call_operand.vmem [shape: f32[2,4,256], index: 1, kind: input, shape index: {}]   ;;  %s967_s2 = inlined_call_operand.vmem [shape: f32[2,4,256], index: 2, kind: input, shape index: {}]   ;;  %s968_s3 = inlined_call_operand.hbm [shape: f32[1,1], index: 3, kind: output, shape index: {0}]   ;;  %s969_s4 = inlined_call_operand.hbm [shape: f32[1,1], index: 4, kind: output, shape index: {1}]   ;;  %s970_s5 = inlined_call_operand.hbm [shape: f32[1,1], index: 5, kind: output, shape index: {2}]  }
   0x1   :  { %12 = vsyncpa [#allocation5], 0  ;;  %s826_s18 = smov 0  }
   0x2 LB: > { %s832_s19 = sadd.s32 4294967295, %s788_s18   ;;  %p626_p0 = scmp.ge.s32.totalorder %s788_s18, 1  ;;  %s788_s18 = sphi %s826_s18, %s18_s18  }
   0x3   : > { %p189_p1 = scmp.lt.s32.totalorder %s788_s18, 3 }
   0x5   : > { %p190_p2 = pnand %p626_p0, %p189_p1 }
   0x6   : > { %p217_p3 = scmp.lt.s32.totalorder (!%p190_p2), %s832_s19, 1  ;;  %p631_p4 = scmp.ne.s32.totalorder (!%p190_p2), %s832_s19, 0 }
   0x7   : > { %193 = sbr.rel (%p190_p2) target bundleno = 415 (0x19f), region = 32 }
   0xe   : > { %s218_s20 = scalar_select %p217_p3, %s832_s19, 1 }
   0xf   : > { %230 = sbr.rel (%p631_p4) target bundleno = 22 (0x16), region = 36  ;;  %vm231_vm0 = vcmask (!%p631_p4), 0   ;;  %v790_v0 = vmov (!%p631_p4), 0.0  }
  0x10   : > { %s642_s21 = sshll.u32 %s218_s20, 3  ;;  %232 = vst.msk [vmem:[#allocation2] sm:$0x1] (!%p631_p4), %vm231_vm0, %v790_v0  ;;  %233 = vst.msk [vmem:[#allocation4] sm:$0x1] (!%p631_p4), %vm231_vm0, %v790_v0 }
  0x11   : > { %s221_s24 = scalar_lea.vmem %s966_s1, %s642_s21  ;;  %s226_s27 = scalar_lea.vmem %s967_s2, %s642_s21  ;;  %234 = vst.msk [vmem:[#allocation6] sm:$0x1] (!%p631_p4), %vm231_vm0, %v790_v0 }
  0x16 PF: > { %v845_v1 = vld [vmem:[%s221_s24] sm:$0xff]  ;;  %s791_s28 = smov 16   ;;  %s792_s29 = smov 1   ;;  %vm243_vm1 = vcmask 1043456   ;;  %vm381_vm7 = vcmask 1040384   ;;  %vm506_vm15 = vcmask 1042432  }
  0x17   : > { %414 = vrot.lane.b32.xlu1 %v845_v1, %s791_s28  ;;  %400 = vrot.lane.b32.xlu0 %v845_v1, %s792_s29  ;;  %v398_v2 = vcombine.high %v845_v1, %v845_v1  ;;  %v852_v3 = vld [vmem:[%s226_s27] sm:$0xff]  ;;  %v278_v4 = vmul.f32 %v845_v1, %v845_v1  ;;  %vm258_vm0 = vcmask 0   ;;  %p662_p5 = scmp.eq.s32.totalorder %s832_s19, 1  ;;  %s793_s8 = smov [#allocation2]  }
  0x18   : > { %v260_v5 = vmul.f32 %v852_v3, %v845_v1  ;;  %v296_v6 = vmul.f32 %v852_v3, %v852_v3  ;;  %v443_v8 = vcombine.high %v852_v3, %v852_v3  ;;  %v238_v51 = vsub.f32 %v845_v1, %v852_v3  ;;  %s529_s9 = sshll.u32 %s793_s8, 4  ;;  %s530_s9 = int_to_ptr.vmem [resolvable:$true] %s529_s9 }
  0x19   : > { %v280_v7 = vcombine.high %v278_v4, %v278_v4  ;;  %v282_v9 = vsel %vm243_vm1, %v278_v4, 0.0  ;;  %s696_s10 = scalar_lea.vmem %s530_s9, 16  ;;  %s702_s11 = scalar_lea.vmem %s530_s9, 32 }
  0x1a   : > { %v283_v10 = vrot.slane %v282_v9, 4  ;;  %v262_v12 = vcombine.high %v260_v5, %v260_v5  ;;  %v298_v14 = vcombine.high %v296_v6, %v296_v6  ;;  %v300_v15 = vsel %vm243_vm1, %v296_v6, 0.0  ;;  %p697_p6 = scmp.ne.s32.totalorder %s530_s9, %s696_s10  ;;  %p703_p9 = scmp.lt.s32.totalorder %s530_s9, %s530_s9 }
  0x1b   : > { %416 = vrot.lane.b32.xlu1 %v398_v2, %s791_s28  ;;  %402 = vrot.lane.b32.xlu0 %v398_v2, %s792_s29  ;;  %v289_v11 = vsel %vm243_vm1, %v280_v7, 0.0  ;;  %v264_v16 = vsel %vm243_vm1, %v260_v5, 0.0  ;;  %v301_v18 = vrot.slane %v300_v15, 4  ;;  %v239_v55 = vand.u32 2147483647, %v238_v51  ;;  %p704_p10 = scmp.lt.s32.totalorder %s702_s11, %s696_s10 }
  0x1c   : > { %v290_v13 = vrot.slane %v289_v11, 4  ;;  %v284_v17 = vadd.f32 %v283_v10, %v282_v9  ;;  %v307_v20 = vsel %vm243_vm1, %v298_v14, 0.0  ;;  %v265_v23 = vrot.slane %v264_v16, 4  ;;  %p698_p7 = pnand %p697_p6, %p662_p5 }
  0x1d   : > { %v302_v22 = vadd.f32 %v301_v18, %v300_v15  ;;  %v271_v24 = vsel %vm243_vm1, %v262_v12, 0.0  ;;  %v308_v26 = vrot.slane %v307_v20, 4  ;;  %v241_v58 = vcombine.high %v239_v55, %v239_v55  ;;  %p705_p11 = por %p704_p10, %p703_p9 }
  0x1e   : > { %v291_v19 = vadd.f32 %v290_v13, %v289_v11  ;;  %v285_v21 = vrot.slane %v284_v17, 2  ;;  %v272_v31 = vrot.slane %v271_v24, 4  ;;  %v266_v34 = vadd.f32 %v265_v23, %v264_v16  ;;  %p699_p8 = pneg %p698_p7 }
  0x1f   : > { %447 = vrot.lane.b32.xlu1 %v443_v8, %s792_s29  ;;  %445 = vrot.lane.b32.xlu0 %v852_v3, %s792_s29  ;;  %v303_v28 = vrot.slane %v302_v22, 2  ;;  %v309_v30 = vadd.f32 %v308_v26, %v307_v20  ;;  %v244_v63 = vsel %vm243_vm1, %v239_v55, 0.0  ;;  %v245_v0 = vsel %vm243_vm1, %v241_v58, 0.0 }
  0x20   : > { %v292_v25 = vrot.slane %v291_v19, 2  ;;  %v286_v27 = vadd.f32 %v285_v21, %v284_v17  ;;  %v273_v40 = vadd.f32 %v272_v31, %v271_v24  ;;  %v267_v42 = vrot.slane %v266_v34, 2  ;;  %p706_p12 = pnand %p705_p11, %p699_p8 }
  0x21   : > { %v304_v33 = vadd.f32 %v303_v28, %v302_v22  ;;  %v310_v36 = vrot.slane %v309_v30, 2  ;;  %v246_v6 = vadd.f32 %v245_v0, %v244_v63  ;;  %v404_v58 = vlaneseq }
  0x22   : > { %v293_v29 = vadd.f32 %v292_v25, %v291_v19  ;;  %v287_v32 = vrot.slane %v286_v27, 1  ;;  %v274_v47 = vrot.slane %v273_v40, 2  ;;  %v268_v49 = vadd.f32 %v267_v42, %v266_v34 }
  0x23   : > { %458 = vrot.lane.b32.xlu1 %v443_v8, %s791_s28  ;;  %456 = vrot.lane.b32.xlu0 %v852_v3, %s791_s28  ;;  %v305_v38 = vrot.slane %v304_v33, 1  ;;  %v311_v39 = vadd.f32 %v310_v36, %v309_v30 }
  0x24   : > { %v294_v35 = vrot.slane %v293_v29, 1  ;;  %v288_v37 = vadd.f32 %v287_v32, %v286_v27  ;;  %v275_v53 = vadd.f32 %v274_v47, %v273_v40  ;;  %v269_v54 = vrot.slane %v268_v49, 1 }
  0x25   : > { %v306_v41 = vadd.f32 %v305_v38, %v304_v33  ;;  %v312_v44 = vrot.slane %v311_v39, 1 }
  0x26   : > { %v295_v43 = vadd.f32 %v294_v35, %v293_v29  ;;  %v276_v56 = vrot.slane %v275_v53, 1  ;;  %v270_v57 = vadd.f32 %v269_v54, %v268_v49 }
  0x27   : > { %v314_v45 = vmul.f32 %v306_v41, %v288_v37  ;;  %v313_v46 = vadd.f32 %v312_v44, %v311_v39 }
  0x28   : > { %v277_v60 = vadd.f32 %v276_v56, %v275_v53 }
  0x29   : > { %v316_v48 = vmax.f32 %v314_v45, 1e-12  ;;  %v315_v50 = vmul.f32 %v313_v46, %v295_v43 }
  0x2b   : > { %684 = vrsqrt.f32 %v316_v48  ;;  %v317_v52 = vmax.f32 %v315_v50, 1e-12 }
  0x2d   : > { %686 = vrsqrt.f32 %v317_v52 }
  0x35   : > { %v685_v59 = vpop.eup %684 }
  0x36   : > { %v320_v61 = vmul.f32 %v685_v59, %v270_v57  ;;  %v405_v59 = vand.u32 127, %v404_v58 }
  0x37   : > { %v687_v62 = vpop.eup %686 }
  0x38   : > { %v632_v2 = vclamps-f32 %v320_v61, 0.999999  ;;  %v321_v4 = vmul.f32 %v687_v62, %v277_v60  ;;  %vm418_vm9 = vcmp.lt.s32.totalorder %v405_v59, 16  ;;  %vm406_vm10 = vcmp.lt.s32.totalorder %v405_v59, 1 }
  0x39   : > { %v426_v62 = vrot.slane %v845_v1, 7 }
  0x3a   : > { %v327_v5 = vand.u32 2147483647, %v632_v2  ;;  %v633_v7 = vclamps-f32 %v321_v4, 0.999999  ;;  %vm375_vm6 = vcmp.lt.f32.partialorder %v632_v2, 0.0 }
  0x3c   : > { %v329_v8 = vmul.f32 -0.0012624911, %v327_v5  ;;  %v328_v9 = vand.u32 2147483647, %v633_v7  ;;  %v357_v10 = vsub.f32 1.0, %v327_v5  ;;  %vm376_vm8 = vcmp.lt.f32.partialorder %v633_v7, 0.0 }
  0x3e   : > { %v331_v11 = vadd.f32 0.00667009, %v329_v8  ;;  %v330_v12 = vmul.f32 -0.0012624911, %v328_v9  ;;  %v358_v14 = vsub.f32 1.0, %v328_v9  ;;  %688 = vrsqrt.f32 %v357_v10 }
  0x3f   : > { %vm361_vm2 = vcmp.eq.f32.partialorder %v357_v10, inf  ;;  %v364_v35 = vand.u32 2147483648, %v357_v10  ;;  %vm363_vm3 = vcmp.eq.f32.partialorder %v357_v10, 0.0  ;;  %v428_v8 = vsub.f32 %v845_v1, %v426_v62 }
  0x40   : > { %v333_v13 = vmul.f32 %v331_v11, %v327_v5  ;;  %v332_v15 = vadd.f32 0.00667009, %v330_v12  ;;  %690 = vrsqrt.f32 %v358_v14  ;;  %vm368_vm4 = vcmp.eq.f32.partialorder %v358_v14, inf }
  0x41   : > { %v371_v41 = vand.u32 2147483648, %v358_v14  ;;  %vm370_vm5 = vcmp.eq.f32.partialorder %v358_v14, 0.0 }
  0x42   : > { %247 = vadd.xlane.f32.xlu0 %v246_v6  ;;  %v335_v16 = vadd.f32 -0.017088126, %v333_v13  ;;  %v334_v17 = vmul.f32 %v332_v15, %v328_v9 }
  0x44   : > { %v337_v18 = vmul.f32 %v335_v16, %v327_v5  ;;  %v336_v19 = vadd.f32 -0.017088126, %v334_v17  ;;  %v467_v16 = vrot.slane %v852_v3, 7 }
  0x46   : > { %v339_v20 = vadd.f32 0.03089188, %v337_v18  ;;  %v338_v21 = vmul.f32 %v336_v19, %v328_v9  ;;  %v432_v18 = vmul.f32 %v428_v8, %v428_v8 }
  0x48   : > { %v341_v22 = vmul.f32 %v339_v20, %v327_v5  ;;  %v340_v23 = vadd.f32 0.03089188, %v338_v21  ;;  %v689_v25 = vpop.eup %688 }
  0x49   : > { %v360_v31 = vmul.f32 %v689_v25, %v357_v10 }
  0x4a   : > { %v343_v24 = vadd.f32 -0.050174303, %v341_v22  ;;  %v342_v26 = vmul.f32 %v340_v23, %v328_v9  ;;  %v691_v29 = vpop.eup %690 }
  0x4b   : > { %v367_v36 = vmul.f32 %v691_v29, %v358_v14  ;;  %v362_v38 = vsel %vm361_vm2, %v357_v10, %v360_v31 }
  0x4c   : > { %v345_v27 = vmul.f32 %v343_v24, %v327_v5  ;;  %v344_v28 = vadd.f32 -0.050174303, %v342_v26  ;;  %v365_v43 = vsel %vm363_vm3, %v364_v35, %v362_v38 }
  0x4d   : > { %v369_v44 = vsel %vm368_vm4, %v358_v14, %v367_v36 }
  0x4e   : > { %v347_v30 = vadd.f32 0.08897899, %v345_v27  ;;  %v346_v32 = vmul.f32 %v344_v28, %v328_v9  ;;  %v372_v47 = vsel %vm370_vm5, %v371_v41, %v369_v44  ;;  %v469_v27 = vsub.f32 %v852_v3, %v467_v16  ;;  %v486_v41 = vld [vmem:[%s965_s0] sm:$0x3] }
  0x50   : > { %v349_v33 = vmul.f32 %v347_v30, %v327_v5  ;;  %v348_v34 = vadd.f32 0.08897899, %v346_v32  ;;  %v473_v32 = vmul.f32 %v469_v27, %v469_v27 }
  0x52   : > { %v351_v37 = vadd.f32 -0.2145988, %v349_v33  ;;  %v350_v39 = vmul.f32 %v348_v34, %v328_v9 }
  0x54   : > { %v353_v40 = vmul.f32 %v351_v37, %v327_v5  ;;  %v352_v42 = vadd.f32 -0.2145988, %v350_v39  ;;  %v489_v37 = vshrl.u32 %v404_v58, 7 }
  0x56   : > { %v355_v45 = vadd.f32 1.5707963, %v353_v40  ;;  %v354_v46 = vmul.f32 %v352_v42, %v328_v9  ;;  %v490_v38 = vsub.s32 0, %v489_v37  ;;  %v494_v39 = vsub.s32 1, %v489_v37 }
  0x58   : > { %v373_v48 = vmul.f32 %v365_v43, %v355_v45  ;;  %v356_v49 = vadd.f32 1.5707963, %v354_v46  ;;  %v491_v43 = vrot.slane %v486_v41, %v490_v38  ;;  %v495_v44 = vrot.slane %v486_v41, %v494_v39 }
  0x5a   : > { %v377_v50 = vsub.f32 3.1415927, %v373_v48  ;;  %v374_v51 = vmul.f32 %v372_v47, %v356_v49  ;;  %v496_v47 = vcombine.low %v491_v43, %v495_v44 }
  0x5c   : > { %v379_v52 = vsel %vm375_vm6, %v377_v50, %v373_v48  ;;  %v378_v53 = vsub.f32 3.1415927, %v374_v51 }
  0x5d   : > { %v382_v54 = vsel %vm381_vm7, %v379_v52, 0.0 }
  0x5e   : > { %v380_v55 = vsel %vm376_vm8, %v378_v53, %v374_v51 }
  0x5f   : > { %v383_v56 = vsel %vm381_vm7, %v380_v55, 0.0 }
  0x60   : > { %v384_v57 = vadd.f32 %v383_v56, %v382_v54  ;;  %v497_v54 = vrot.slane %v496_v47, 7 }
  0x62   : > { %385 = vadd.xlane.f32.xlu1 %v384_v57 }
  0x89   : > { %v415_v60 = vpop.permute.xlu1 %414  ;;  %v401_v61 = vpop.permute.xlu0 %400 }
  0x8d   : > { %v417_v63 = vpop.permute.xlu1 %416  ;;  %v403_v0 = vpop.permute.xlu0 %402 }
  0x8e   : > { %v419_v2 = vsel %vm418_vm9, %v415_v60, %v417_v63  ;;  %v420_v4 = vsel %vm418_vm9, %v417_v63, %v415_v60  ;;  %v407_v5 = vsel %vm406_vm10, %v401_v61, %v403_v0  ;;  %v408_v6 = vsel %vm406_vm10, %v403_v0, %v401_v61 }
  0x8f   : > { %v423_v7 = vcombine.low %v420_v4, %v419_v2  ;;  %v411_v9 = vcombine.low %v408_v6, %v407_v5 }
  0x91   : > { %v425_v10 = vsub.f32 %v845_v1, %v423_v7  ;;  %v413_v11 = vsub.f32 %v845_v1, %v411_v9  ;;  %v448_v12 = vpop.permute.xlu1 %447  ;;  %v446_v13 = vpop.permute.xlu0 %445 }
  0x92   : > { %v449_v14 = vsel %vm406_vm10, %v446_v13, %v448_v12  ;;  %v450_v15 = vsel %vm406_vm10, %v448_v12, %v446_v13 }
  0x93   : > { %v430_v17 = vmul.f32 %v425_v10, %v425_v10  ;;  %v429_v19 = vmul.f32 %v413_v11, %v413_v11  ;;  %v453_v20 = vcombine.low %v450_v15, %v449_v14  ;;  %v237_v15 = vld [vmem:[#allocation2] sm:$0x1] }
  0x95   : > { %v431_v21 = vadd.f32 %v430_v17, %v429_v19  ;;  %v459_v22 = vpop.permute.xlu1 %458  ;;  %v457_v23 = vpop.permute.xlu0 %456  ;;  %v455_v26 = vsub.f32 %v852_v3, %v453_v20 }
  0x96   : > { %v460_v24 = vsel %vm418_vm9, %v457_v23, %v459_v22  ;;  %v461_v25 = vsel %vm418_vm9, %v459_v22, %v457_v23 }
  0x97   : > { %v433_v1 = vadd.f32 %v432_v18, %v431_v21  ;;  %v464_v28 = vcombine.low %v461_v25, %v460_v24  ;;  %v470_v31 = vmul.f32 %v455_v26, %v455_v26 }
  0x99   : > { %v434_v29 = vadd.f32 1e-06, %v433_v1  ;;  %v466_v30 = vsub.f32 %v852_v3, %v464_v28 }
  0x9b   : > { %v471_v33 = vmul.f32 %v466_v30, %v466_v30  ;;  %692 = vrsqrt.f32 %v434_v29  ;;  %vm437_vm11 = vcmp.eq.f32.partialorder %v434_v29, inf  ;;  %v440_v48 = vand.u32 2147483648, %v434_v29 }
  0x9c   : > { %vm439_vm13 = vcmp.eq.f32.partialorder %v434_v29, 0.0 }
  0x9d   : > { %v472_v34 = vadd.f32 %v471_v33, %v470_v31 }
  0x9f   : > { %v474_v35 = vadd.f32 %v473_v32, %v472_v34 }
  0xa1   : > { %v475_v36 = vadd.f32 1e-06, %v474_v35 }
  0xa3   : > { %694 = vrsqrt.f32 %v475_v36  ;;  %vm478_vm12 = vcmp.eq.f32.partialorder %v475_v36, inf  ;;  %v481_v49 = vand.u32 2147483648, %v475_v36  ;;  %vm480_vm14 = vcmp.eq.f32.partialorder %v475_v36, 0.0 }
  0xa5   : > { %v693_v40 = vpop.eup %692 }
  0xa6   : > { %v436_v42 = vmul.f32 %v693_v40, %v434_v29 }
  0xa8   : > { %v438_v45 = vsel %vm437_vm11, %v434_v29, %v436_v42 }
  0xa9   : > { %v441_v51 = vsel %vm439_vm13, %v440_v48, %v438_v45 }
  0xad   : > { %v695_v3 = vpop.eup %694 }
  0xae   : > { %v477_v46 = vmul.f32 %v695_v3, %v475_v36 }
  0xb0   : > { %v479_v50 = vsel %vm478_vm12, %v475_v36, %v477_v46 }
  0xb1   : > { %v482_v52 = vsel %vm480_vm14, %v481_v49, %v479_v50 }
  0xb2   : > { %v484_v53 = vsub.f32 %v441_v51, %v482_v52 }
  0xb4   : > { %v485_v55 = vand.u32 2147483647, %v484_v53 }
  0xb6   : > { %v499_v56 = vmul.f32 %v497_v54, %v485_v55 }
  0xb8   : > { %v501_v57 = vcombine.high %v499_v56, %v499_v56  ;;  %v502_v58 = vrot.slane %v499_v56, 1 }
  0xba   : > { %v503_v59 = vrot.slane %v501_v57, 1  ;;  %v507_v60 = vsel %vm506_vm15, %v502_v58, 0.0 }
  0xbc   : > { %v508_v61 = vsel %vm506_vm15, %v503_v59, 0.0 }
  0xbd   : > { %v509_v62 = vadd.f32 %v508_v61, %v507_v60 }
  0xbf   : > { %510 = vadd.xlane.f32.xlu0 %v509_v62 }
  0xcf   : > { %v248_v63 = vpop.xlane.xlu0 %247 }
  0xd0   : > { %v249_v0 = vrot.slane %v248_v63, 4 }
  0xd2   : > { %v250_v2 = vadd.f32 %v249_v0, %v248_v63 }
  0xd4   : > { %v251_v4 = vrot.slane %v250_v2, 2 }
  0xd6   : > { %v252_v5 = vadd.f32 %v251_v4, %v250_v2 }
  0xd8   : > { %v253_v6 = vrot.slane %v252_v5, 1 }
  0xda   : > { %v254_v7 = vadd.f32 %v253_v6, %v252_v5 }
  0xdc   : > { %644 = vpush %v254_v7 }
  0xef   : > { %v386_v8 = vpop.xlane.xlu1 %385 }
  0xf0   : > { %v387_v9 = vrot.slane %v386_v8, 4 }
  0xf2   : > { %v388_v10 = vadd.f32 %v387_v9, %v386_v8 }
  0xf4   : > { %v389_v11 = vrot.slane %v388_v10, 2 }
  0xf6   : > { %v390_v12 = vadd.f32 %v389_v11, %v388_v10 }
  0xf8   : > { %v391_v13 = vrot.slane %v390_v12, 1 }
  0xfa   : > { %v392_v14 = vadd.f32 %v391_v13, %v390_v12 }
  0xfc   : > { %646 = vpush %v392_v14 }
 0x10d   : > { %s645_s7 = spop %644 }
 0x10e   : > { %v256_v16 = vstv %s645_s7 }
 0x10f   : > { %v257_v17 = vadd.f32 %v256_v16, %v237_v15 }
 0x111   : > { %259 = vst.msk [vmem:[#allocation2] sm:$0x1] %vm258_vm0, %v257_v17 }
 0x112   : > { %709 = shalt.err (!%p706_p12)
}
 0x113   : > { %s710_s14 = scalar_lea.hbm %s968_s3, 16 }
 0x114   : > { %p711_p13 = scmp.ne.s32.totalorder %s968_s3, %s710_s14  ;;  %p716_p2 = scmp.lt.u32.totalorder %s710_s14, %s968_s3 }
 0x116   : > { %p712_p0 = pnand %p711_p13, %p662_p5 }
 0x118   : > { %p713_p1 = pneg %p712_p0 }
 0x11a   : > { %p718_p3 = pnand %p716_p2, %p713_p1 }
 0x11c   : > { %721 = shalt.err (!%p718_p3)
}
 0x11d   : > { %651 = dma.vmem_to_hbm [thread:$0]  (%p662_p5), %s530_s9, 16, %s968_s3, [#allocation3]   ;;  %v326_v18 = vld [vmem:[#allocation4] sm:$0x1] }
 0x11e   : > { %s794_s23 = smov [#allocation4]  }
 0x11f   : > { %s540_s24 = sshll.u32 %s794_s23, 4  ;;  %s541_s24 = int_to_ptr.vmem [resolvable:$true] %s540_s24 }
 0x120   : > { %s722_s26 = scalar_lea.vmem %s541_s24, 16  ;;  %s728_s27 = scalar_lea.vmem %s541_s24, 32 }
 0x121   : > { %p723_p4 = scmp.ne.s32.totalorder %s541_s24, %s722_s26  ;;  %p729_p8 = scmp.lt.s32.totalorder %s541_s24, %s541_s24 }
 0x122   : > { %p730_p9 = scmp.lt.s32.totalorder %s728_s27, %s722_s26 }
 0x123   : > { %p724_p6 = pnand %p723_p4, %p662_p5 }
 0x124   : > { %p731_p10 = por %p730_p9, %p729_p8 }
 0x125   : > { %p725_p7 = pneg %p724_p6 }
 0x127   : > { %p732_p11 = pnand %p731_p10, %p725_p7 }
 0x12d   : > { %s647_s25 = spop %646 }
 0x12e   : > { %v394_v19 = vstv %s647_s25 }
 0x12f   : > { %v395_v20 = vadd.f32 %v394_v19, %v326_v18 }
 0x131   : > { %396 = vst.msk [vmem:[#allocation4] sm:$0x1] %vm258_vm0, %v395_v20 }
 0x132   : > { %735 = shalt.err (!%p732_p11)
}
 0x133   : > { %s736_s30 = scalar_lea.hbm %s969_s4, 16 }
 0x134   : > { %p737_p12 = scmp.ne.s32.totalorder %s969_s4, %s736_s30  ;;  %p742_p1 = scmp.lt.u32.totalorder %s736_s30, %s969_s4 }
 0x136   : > { %p738_p13 = pnand %p737_p12, %p662_p5 }
 0x138   : > { %p739_p0 = pneg %p738_p13 }
 0x13a   : > { %p744_p2 = pnand %p742_p1, %p739_p0 }
 0x13c   : > { %747 = shalt.err (!%p744_p2)
}
 0x13d   : > { %653 = dma.vmem_to_hbm [thread:$0]  (%p662_p5), %s541_s24, 16, %s969_s4, [#allocation5]   ;;  %v483_v27 = vld [vmem:[#allocation6] sm:$0x1] }
 0x13e   : > { %s795_s12 = smov [#allocation6]  }
 0x13f   : > { %s551_s13 = sshll.u32 %s795_s12, 4  ;;  %s552_s13 = int_to_ptr.vmem [resolvable:$true] %s551_s13 }
 0x140   : > { %s748_s15 = scalar_lea.vmem %s552_s13, 16  ;;  %s754_s16 = scalar_lea.vmem %s552_s13, 32 }
 0x141   : > { %p749_p3 = scmp.ne.s32.totalorder %s552_s13, %s748_s15  ;;  %p755_p7 = scmp.lt.s32.totalorder %s552_s13, %s552_s13 }
 0x142   : > { %p756_p8 = scmp.lt.s32.totalorder %s754_s16, %s748_s15 }
 0x143   : > { %p750_p4 = pnand %p749_p3, %p662_p5 }
 0x144   : > { %p757_p9 = por %p756_p8, %p755_p7 }
 0x145   : > { %p751_p6 = pneg %p750_p4 }
 0x147   : > { %p758_p10 = pnand %p757_p9, %p751_p6 }
 0x14c   : > { %v511_v21 = vpop.xlane.xlu0 %510 }
 0x14d   : > { %v512_v22 = vrot.slane %v511_v21, 4 }
 0x14f   : > { %v513_v23 = vadd.f32 %v512_v22, %v511_v21 }
 0x151   : > { %v514_v24 = vrot.slane %v513_v23, 2 }
 0x153   : > { %v515_v25 = vadd.f32 %v514_v24, %v513_v23 }
 0x155   : > { %v516_v1 = vrot.slane %v515_v25, 1 }
 0x157   : > { %v517_v26 = vadd.f32 %v516_v1, %v515_v25 }
 0x159   : > { %648 = vpush %v517_v26 }
 0x18a   : > { %s649_s14 = spop %648 }
 0x18b   : > { %v519_v28 = vstv %s649_s14 }
 0x18c   : > { %v520_v29 = vadd.f32 %v519_v28, %v483_v27 }
 0x18e   : > { %521 = vst.msk [vmem:[#allocation6] sm:$0x1] %vm258_vm0, %v520_v29 }
 0x18f   : > { %761 = shalt.err (!%p758_p10)
}
 0x190   : > { %s762_s21 = scalar_lea.hbm %s970_s5, 16 }
 0x191   : > { %p763_p11 = scmp.ne.s32.totalorder %s970_s5, %s762_s21  ;;  %p768_p0 = scmp.lt.u32.totalorder %s762_s21, %s970_s5 }
 0x193   : > { %p764_p12 = pnand %p763_p11, %p662_p5 }
 0x195   : > { %p765_p13 = pneg %p764_p12 }
 0x197   : > { %p770_p1 = pnand %p768_p0, %p765_p13 }
 0x199   : > { %773 = shalt.err (!%p770_p1)
}
 0x19a   : > { %655 = dma.vmem_to_hbm [thread:$0]  (%p662_p5), %s552_s13, 16, %s970_s5, [#allocation5]  }
 0x19b   : > { %779 = dma.done.wait (%p662_p5), [#allocation3], 16  }
 0x19c   : > { %781 = vsyncadd (%p662_p5), [#allocation3], 4294967280 }
 0x19d   : > { %783 = dma.done.wait (%p662_p5), [#allocation5], 32  }
 0x19e   : > { %785 = vsyncadd (%p662_p5), [#allocation5], 4294967264 }
 0x19f PF: > { %s18_s18 = sadd.s32 1, %s788_s18  }
 0x1a0   : > { %p15_p2 = scmp.ge.s32.totalorder %s18_s18, 4  }
 0x1a2   :  { %17 = sbr.rel (!%p15_p2) target bundleno = 2 (0x2), region = 82 }
 0x1a9   :  { %572 = vsyncpa [#allocation3], 1 }
 0x1aa   :  { %574 = vsyncpa [#allocation3 + $0x1], 1 }
 0x1ab   :  { %575 = vsyncpa [#allocation5], 1 }

</bundles_post_ra>
